<compile_context>
chip_gen: v7x
topology: tpu7x:2x2x1
jax: 0.10.0
libtpu: 0.0.40
codegen_flags: <defaults>
</compile_context>

<pallas_src>
import functools

import jax
import jax.numpy as jnp
from jax.experimental import pallas as pl
from jax.experimental.pallas import tpu as pltpu


def _round_up(x, m):
    return (x + m - 1) // m * m


def _cdiv(a, b):
    return (a + b - 1) // b


def _vmem_budget_bytes():
    """Per-core VMEM budget (leave headroom for compiler-internal scratch)."""
    try:
        info = pltpu.get_tpu_info()
        cap = int(getattr(info, "vmem_capacity_bytes", 64 * 1024 * 1024))
    except Exception:
        cap = 64 * 1024 * 1024  # conservative (v7x-sized) fallback
    # v7x (64 MiB)  -> 48 MiB ; v5e/v6e (128 MiB) -> 112 MiB
    return max(32 * 1024 * 1024, min(cap - 16 * 1024 * 1024, 112 * 1024 * 1024))


def _estimate_vmem_bytes(TM, TN, Dp, x_bytes, out_bytes, w_bytes):
    return (2 * TM * Dp * x_bytes        # x row tile (double-buffered)
            + 2 * Dp * TN * w_bytes      # W column tile (double-buffered)
            + 2 * TM * TN * out_bytes    # output tile (double-buffered)
            + 2 * 2 * TN * 4             # bias tile
            + 2 * 2 * Dp * 4             # gamma/beta (resident)
            + TM * Dp * w_bytes          # normalized-activation scratch (bf16)
            + 3 * TM * Dp * 4)           # f32 temporaries in the LN block


def _prenorm_linear_kernel(x_ref, gamma_ref, beta_ref, w_ref, b_ref, o_ref,
                           y_ref, *, d_real, mxu_dtype):
    """x:(TM,Dp)  gamma/beta:(1,Dp) f32  w:(Dp,TN) bf16  b:(1,TN) f32
       o:(TM,TN)  y_ref: (TM,Dp) bf16 scratch (normalized activations)."""

    # LayerNorm + bf16 cast only once per row tile; reused for every column
    # block j of the Linear.
    @pl.when(pl.program_id(1) == 0)
    def _():
        x = x_ref[...].astype(jnp.float32)
        inv_d = jnp.float32(1.0 / d_real)
        # One pass: sum and sum-of-squares.  Padding lanes (when D % 128 != 0)
        # are zero in the padded x copy, so they do not perturb the stats.
        mean = jnp.sum(x, axis=-1, keepdims=True) * inv_d
        mean_sq = jnp.sum(x * x, axis=-1, keepdims=True) * inv_d
        var = jnp.maximum(mean_sq - mean * mean, 0.0)
        inv_std = jax.lax.rsqrt(var + 1e-5)               # EUP slot
        # Folded affine: y = x * a + c.  gamma/beta padding lanes are zero, so
        # a = c = 0 there and y's padding lanes stay zero.
        a = inv_std * gamma_ref[...]
        c = beta_ref[...] - mean * a
        y_ref[...] = (x * a + c).astype(mxu_dtype)

    # fn = Linear(dim, dim): bf16 MXU matmul, f32 accumulation.
    out = jnp.dot(y_ref[...], w_ref[...], preferred_element_type=jnp.float32)
    o_ref[...] = (out + b_ref[...]).astype(o_ref.dtype)


def prenorm_linear(x, gamma, beta, w, b, *, row_tile=1024, col_tile=512,
                   mxu_dtype=jnp.bfloat16):
    """PreNorm(dim, Linear(dim, dim)) forward.  x: (B, S, D) -> (B, S, D)."""
    B, S, D = x.shape
    N = B * S
    f32 = jnp.float32

    Dp = _round_up(D, 128)                       # lane-dense feature width
    budget = _vmem_budget_bytes()

    x_bytes = jnp.dtype(x.dtype).itemsize
    out_bytes = x_bytes
    w_bytes = jnp.dtype(mxu_dtype).itemsize

    # --- column tile: largest multiple of 128 dividing Dp and <= col_tile ---
    if Dp <= col_tile:
        TN = Dp
    else:
        TN = 128
        cand = max(128, (col_tile // 128) * 128)
        while cand >= 128:
            if Dp % cand == 0:
                TN = cand
                break
            cand -= 128

    # --- row tile: largest candidate that fits the VMEM budget ---
    if N < 8:
        cands = [N]                              # block == full array dim
    else:
        cap = min((N // 8) * 8, max(8, _round_up(row_tile, 8)))
        base = [1024, 768, 512, 384, 256, 128, 64, 32, 16, 8]
        cands = [c for c in base if c <= cap] or [cap]
    TM = cands[-1]
    for c in cands:
        if _estimate_vmem_bytes(c, TN, Dp, x_bytes, out_bytes, w_bytes) <= 0.7 * budget:
            TM = c
            break

    # --- host-side operand prep (parameters padded/cast once; x only padded
    #     along lanes when D is not 128-aligned) ---
    x2 = x.reshape(N, D)
    if Dp != D:
        x2 = jnp.zeros((N, Dp), x.dtype).at[:, :D].set(x2)
        gamma2 = jnp.zeros((1, Dp), f32).at[:, :D].set(gamma.astype(f32).reshape(1, D))
        beta2 = jnp.zeros((1, Dp), f32).at[:, :D].set(beta.astype(f32).reshape(1, D))
        w2 = jnp.zeros((Dp, Dp), mxu_dtype).at[:D, :D].set(w.astype(mxu_dtype))
        b2 = jnp.zeros((1, Dp), f32).at[:, :D].set(b.astype(f32).reshape(1, D))
    else:
        gamma2 = gamma.astype(f32).reshape(1, D)
        beta2 = beta.astype(f32).reshape(1, D)
        w2 = w.astype(mxu_dtype)
        b2 = b.astype(f32).reshape(1, D)

    n_row_blocks = _cdiv(N, TM)
    n_col_blocks = Dp // TN
    grid = (n_row_blocks, n_col_blocks)

    kernel = functools.partial(_prenorm_linear_kernel,
                               d_real=D, mxu_dtype=mxu_dtype)

    cost = pl.CostEstimate(
        flops=2 * N * Dp * Dp + 8 * N * Dp,
        transcendentals=N,                                    # one rsqrt per row
        bytes_accessed=(N * Dp * x_bytes                      # x in (read once)
                        + n_row_blocks * Dp * Dp * w_bytes    # W re-read per row block
                        + N * Dp * out_bytes                  # out
                        + n_row_blocks * Dp * 4               # bias re-reads
                        + 2 * Dp * 4),                        # gamma/beta
    )

    out2 = pl.pallas_call(
        kernel,
        out_shape=jax.ShapeDtypeStruct((N, Dp), x.dtype),
        grid_spec=pltpu.PrefetchScalarGridSpec(
            num_scalar_prefetch=0,
            grid=grid,
            in_specs=[
                pl.BlockSpec((TM, Dp), lambda i, j: (i, 0)),   # x rows (constant over j)
                pl.BlockSpec((1, Dp), lambda i, j: (0, 0)),    # gamma (resident)
                pl.BlockSpec((1, Dp), lambda i, j: (0, 0)),    # beta  (resident)
                pl.BlockSpec((Dp, TN), lambda i, j: (0, j)),   # W column tile
                pl.BlockSpec((1, TN), lambda i, j: (0, j)),    # bias column tile
            ],
            out_specs=pl.BlockSpec((TM, TN), lambda i, j: (i, j)),
            scratch_shapes=[pltpu.VMEM((TM, Dp), mxu_dtype)],  # cached normalized acts
        ),
        compiler_params=pltpu.CompilerParams(
            dimension_semantics=("parallel", "arbitrary"),
            vmem_limit_bytes=budget,
        ),
        cost_estimate=cost,
    )(x2, gamma2, beta2, w2, b2)

    if Dp != D:
        out2 = out2[:, :D]
    return out2.reshape(B, S, D)


def reference_f32(x, gamma, beta, w, b):
    """Pure f32 reference matching nn.LayerNorm + nn.Linear semantics."""
    x32 = x.astype(jnp.float32)
    mean = jnp.mean(x32, axis=-1, keepdims=True)
    var = jnp.mean((x32 - mean) ** 2, axis=-1, keepdims=True)
    y = (x32 - mean) * jax.lax.rsqrt(var + 1e-5) * gamma + beta
    return (y @ w.astype(jnp.float32) + b).astype(x.dtype)


def reference_matched(x, gamma, beta, w, b, mxu_dtype=jnp.bfloat16):
    """Reference that mirrors the kernel's bf16 MXU operands."""
    x32 = x.astype(jnp.float32)
    mean = jnp.mean(x32, axis=-1, keepdims=True)
    var = jnp.mean((x32 - mean) ** 2, axis=-1, keepdims=True)
    y = (x32 - mean) * jax.lax.rsqrt(var + 1e-5) * gamma + beta
    out = jnp.dot(y.astype(mxu_dtype), w.astype(mxu_dtype),
                  preferred_element_type=jnp.float32) + b
    return out.astype(x.dtype)


def _make_case(key, B, S, D, dtype):
    kx, kw, kb, kg, kbt = jax.random.split(key, 5)
    x = jax.random.normal(kx, (B, S, D), dtype=jnp.float32).astype(dtype)
    # nn.LayerNorm(dim) params (default weight=1, bias=0; perturbed slightly
    # so the affine path is actually exercised).
    gamma = 1.0 + 0.1 * jax.random.normal(kg, (D,), dtype=jnp.float32)
    beta = 0.05 * jax.random.normal(kbt, (D,), dtype=jnp.float32)
    # fn = Linear(dim, dim), deterministic init.
    w = jax.random.normal(kw, (D, D), dtype=jnp.float32) * 0.02
    b = jax.random.normal(kb, (D,), dtype=jnp.float32) * 0.01
    return x, gamma, beta, w, b


if __name__ == "__main__":
    key = jax.random.PRNGKey(0)
    k1, k2 = jax.random.split(key)

    # Case 1: small lane-padded feature dim (D=32 -> padded to 128), f32 I/O.
    x, gamma, beta, w, b = _make_case(k1, 2, 8, 32, jnp.float32)
    out = jax.block_until_ready(prenorm_linear(x, gamma, beta, w, b))
    assert out.shape == x.shape
    ref_m = reference_matched(x, gamma, beta, w, b)
    ref_f = reference_f32(x, gamma, beta, w, b)
    assert jnp.allclose(out, ref_m, atol=5e-3, rtol=5e-3), "case1: mismatch vs bf16-matched reference"
    assert jnp.allclose(out, ref_f, atol=3e-2, rtol=3e-2), "case1: mismatch vs f32 reference"

    # Case 2: lane-aligned D (no padded copy of x), bf16 activations, ragged
    # row count (N=18) exercising the masked edge row block.
    x, gamma, beta, w, b = _make_case(k2, 2, 9, 128, jnp.bfloat16)
    out = jax.block_until_ready(prenorm_linear(x, gamma, beta, w, b))
    assert out.shape == x.shape
    ref_m = reference_matched(x, gamma, beta, w, b).astype(jnp.float32)
    assert jnp.allclose(out.astype(jnp.float32), ref_m, atol=6e-2, rtol=6e-2), \
        "case2: mismatch vs bf16-matched reference"

    print("KERNEL_OK")
</pallas_src>

<mosaic_0001>
module attributes {stable_mosaic.version = 11 : i64} {
  func.func @_prenorm_linear_kernel(%arg0: i32, %arg1: i32, %arg2: memref<16x128xf32, #tpu.memory_space<vmem>>, %arg3: memref<1x128xf32, #tpu.memory_space<vmem>>, %arg4: memref<1x128xf32, #tpu.memory_space<vmem>>, %arg5: memref<128x128xbf16, #tpu.memory_space<vmem>>, %arg6: memref<1x128xf32, #tpu.memory_space<vmem>>, %arg7: memref<16x128xf32, #tpu.memory_space<vmem>>, %arg8: memref<16x128xbf16, #tpu.memory_space<vmem>>) attributes {dimension_semantics = [#tpu.dimension_semantics<parallel>, #tpu.dimension_semantics<arbitrary>], iteration_bounds = array<i64: 1, 1>, scalar_prefetch = 0 : i64, scratch_operands = 1 : i64, tpu.core_type = #tpu.core_type<tc>, window_params = [{transform_indices = @transform_0, window_bounds = array<i64: 16, 128>}, {pipeline_mode = #tpu.pipeline_mode<synchronous>, transform_indices = @transform_1, window_bounds = array<i64: 1, 128>}, {pipeline_mode = #tpu.pipeline_mode<synchronous>, transform_indices = @transform_2, window_bounds = array<i64: 1, 128>}, {transform_indices = @transform_3, window_bounds = array<i64: 128, 128>}, {transform_indices = @transform_4, window_bounds = array<i64: 1, 128>}, {transform_indices = @transform_5, window_bounds = array<i64: 16, 128>}]} {
    %c0_i32 = arith.constant 0 : i32
    %0 = arith.cmpi eq, %arg1, %c0_i32 : i32
    %1 = arith.extui %0 : i1 to i32
    %c0_i32_0 = arith.constant 0 : i32
    %2 = arith.cmpi ne, %1, %c0_i32_0 : i32
    scf.if %2 {
      %c0_8 = arith.constant 0 : index
      %c0_9 = arith.constant 0 : index
      %10 = vector.load %arg2[%c0_8, %c0_9] : memref<16x128xf32, #tpu.memory_space<vmem>>, vector<16x128xf32>
      %cst_10 = arith.constant dense<0.000000e+00> : vector<16xf32>
      %11 = vector.multi_reduction <add>, %10, %cst_10 [1] : vector<16x128xf32> to vector<16xf32>
      %12 = vector.shape_cast %11 : vector<16xf32> to vector<16x1xf32>
      %cst_11 = arith.constant 3.125000e-02 : f32
      %13 = vector.broadcast %cst_11 : f32 to vector<16x1xf32>
      %14 = arith.mulf %12, %13 : vector<16x1xf32>
      %15 = arith.mulf %10, %10 : vector<16x128xf32>
      %cst_12 = arith.constant dense<0.000000e+00> : vector<16xf32>
      %16 = vector.multi_reduction <add>, %15, %cst_12 [1] : vector<16x128xf32> to vector<16xf32>
      %17 = vector.shape_cast %16 : vector<16xf32> to vector<16x1xf32>
      %cst_13 = arith.constant 3.125000e-02 : f32
      %18 = vector.broadcast %cst_13 : f32 to vector<16x1xf32>
      %19 = arith.mulf %17, %18 : vector<16x1xf32>
      %20 = arith.mulf %14, %14 : vector<16x1xf32>
      %21 = arith.subf %19, %20 : vector<16x1xf32>
      %cst_14 = arith.constant 0.000000e+00 : f32
      %22 = vector.broadcast %cst_14 : f32 to vector<16x1xf32>
      %23 = arith.maximumf %21, %22 : vector<16x1xf32>
      %cst_15 = arith.constant 9.99999974E-6 : f32
      %24 = vector.broadcast %cst_15 : f32 to vector<16x1xf32>
      %25 = arith.addf %23, %24 : vector<16x1xf32>
      %26 = math.rsqrt %25 : vector<16x1xf32>
      %c0_16 = arith.constant 0 : index
      %c0_17 = arith.constant 0 : index
      %27 = vector.load %arg3[%c0_16, %c0_17] : memref<1x128xf32, #tpu.memory_space<vmem>>, vector<1x128xf32>
      %28 = vector.broadcast %26 : vector<16x1xf32> to vector<16x128xf32>
      %29 = vector.broadcast %27 : vector<1x128xf32> to vector<16x128xf32>
      %30 = arith.mulf %28, %29 : vector<16x128xf32>
      %c0_18 = arith.constant 0 : index
      %c0_19 = arith.constant 0 : index
      %31 = vector.load %arg4[%c0_18, %c0_19] : memref<1x128xf32, #tpu.memory_space<vmem>>, vector<1x128xf32>
      %32 = vector.broadcast %14 : vector<16x1xf32> to vector<16x128xf32>
      %33 = arith.mulf %32, %30 : vector<16x128xf32>
      %34 = vector.broadcast %31 : vector<1x128xf32> to vector<16x128xf32>
      %35 = arith.subf %34, %33 : vector<16x128xf32>
      %36 = arith.mulf %10, %30 : vector<16x128xf32>
      %37 = arith.addf %36, %35 : vector<16x128xf32>
      %38 = arith.truncf %37 : vector<16x128xf32> to vector<16x128xbf16>
      %c0_20 = arith.constant 0 : index
      %c0_21 = arith.constant 0 : index
      %39 = vector.load %arg8[%c0_20, %c0_21] : memref<16x128xbf16, #tpu.memory_space<vmem>>, vector<16x128xbf16>
      tpu.vector_store %arg8[%c0_20, %c0_21], %38 {strides = array<i32>} : memref<16x128xbf16, #tpu.memory_space<vmem>>, vector<16x128xbf16>,
    } else {
    }
    %c0 = arith.constant 0 : index
    %c0_1 = arith.constant 0 : index
    %3 = vector.load %arg8[%c0, %c0_1] : memref<16x128xbf16, #tpu.memory_space<vmem>>, vector<16x128xbf16>
    %c0_2 = arith.constant 0 : index
    %c0_3 = arith.constant 0 : index
    %4 = vector.load %arg5[%c0_2, %c0_3] : memref<128x128xbf16, #tpu.memory_space<vmem>>, vector<128x128xbf16>
    %cst = arith.constant dense<0.000000e+00> : vector<16x128xf32>
    %5 = tpu.matmul %3, %4, %cst {dimension_numbers = #tpu.dot_dimension_numbers<[1], [0], [0], [1], [0, 0, 1, 1], [], []>} : vector<16x128xbf16>, vector<128x128xbf16>, vector<16x128xf32> -> vector<16x128xf32>
    %c0_4 = arith.constant 0 : index
    %c0_5 = arith.constant 0 : index
    %6 = vector.load %arg6[%c0_4, %c0_5] : memref<1x128xf32, #tpu.memory_space<vmem>>, vector<1x128xf32>
    %7 = vector.broadcast %6 : vector<1x128xf32> to vector<16x128xf32>
    %8 = arith.addf %5, %7 : vector<16x128xf32>
    %c0_6 = arith.constant 0 : index
    %c0_7 = arith.constant 0 : index
    %9 = vector.load %arg7[%c0_6, %c0_7] : memref<16x128xf32, #tpu.memory_space<vmem>>, vector<16x128xf32>
    tpu.vector_store %arg7[%c0_6, %c0_7], %8 {strides = array<i32>} : memref<16x128xf32, #tpu.memory_space<vmem>>, vector<16x128xf32>,
    return
  }
  func.func @transform_0(%arg0: i32, %arg1: i32) -> (i32, i32) {
    %c0_i32 = arith.constant 0 : i32
    %c0_i32_0 = arith.constant 0 : i32
    return %arg0, %c0_i32 : i32, i32
  }
  func.func @transform_1(%arg0: i32, %arg1: i32) -> (i32, i32) {
    %c0_i32 = arith.constant 0 : i32
    %c0_i32_0 = arith.constant 0 : i32
    %c0_i32_1 = arith.constant 0 : i32
    return %c0_i32, %c0_i32_0 : i32, i32
  }
  func.func @transform_2(%arg0: i32, %arg1: i32) -> (i32, i32) {
    %c0_i32 = arith.constant 0 : i32
    %c0_i32_0 = arith.constant 0 : i32
    %c0_i32_1 = arith.constant 0 : i32
    return %c0_i32, %c0_i32_0 : i32, i32
  }
  func.func @transform_3(%arg0: i32, %arg1: i32) -> (i32, i32) {
    %c0_i32 = arith.constant 0 : i32
    %c0_i32_0 = arith.constant 0 : i32
    return %c0_i32, %arg1 : i32, i32
  }
  func.func @transform_4(%arg0: i32, %arg1: i32) -> (i32, i32) {
    %c0_i32 = arith.constant 0 : i32
    %c0_i32_0 = arith.constant 0 : i32
    return %c0_i32, %arg1 : i32, i32
  }
  func.func @transform_5(%arg0: i32, %arg1: i32) -> (i32, i32) {
    %c0_i32 = arith.constant 0 : i32
    return %arg0, %arg1 : i32, i32
  }
}

</mosaic_0001>

<bundles_post_ra>
// kernel: tpu_custom_call.1
= control target key start
LH: loop header
LB: loop body
LE: loop exit
PB: predicated region body
PF: predicated region fallthrough
CT: control target
= control target key end

     0   :  { %10 = vsyncpa [#allocation4], 0  ;;  %s474_s0 = inlined_call_operand.hbm [shape: f32[16,128], index: 0, kind: input, shape index: {}]   ;;  %s475_s1 = inlined_call_operand.vmem [shape: f32[1,128], index: 1, kind: input, shape index: {}]   ;;  %s476_s2 = inlined_call_operand.vmem [shape: f32[1,128], index: 2, kind: input, shape index: {}]   ;;  %s477_s3 = inlined_call_operand.hbm [shape: bf16[128,128], index: 3, kind: input, shape index: {}]   ;;  %s478_s4 = inlined_call_operand.vmem [shape: f32[1,128], index: 4, kind: input, shape index: {}]   ;;  %s479_s5 = inlined_call_operand.hbm [shape: f32[16,128], index: 5, kind: output, shape index: {}]  }
   0x1   :  { %11 = vsyncpa [#allocation7], 0 }
   0x2   :  { %12 = vsyncpa [#allocation5], 0  ;;  %s372_s18 = smov [#allocation3]   ;;  %s300_s22 = scalar_lea.hbm %s474_s0, 256 }
   0x3   :  { %s18_s19 = sshll.u32 %s372_s18, 4  ;;  %p301_p0 = scmp.ne.s32.totalorder %s474_s0, %s300_s22  ;;  %s19_s19 = int_to_ptr.vmem [resolvable:$true] %s18_s19 }
   0x4   :  { %p304_p1 = scmp.lt.u32.totalorder %s300_s22, %s474_s0 }
   0x6   :  { %p306_p2 = pnand %p304_p1, %p301_p0 }
   0x8   :  { %309 = shalt.err (!%p306_p2)
}
   0x9   :  { %s310_s27 = scalar_lea.vmem %s19_s19, 256  ;;  %p315_p4 = scmp.lt.s32.totalorder %s19_s19, %s19_s19 }
   0xa   :  { %p311_p3 = scmp.ne.s32.totalorder %s19_s19, %s310_s27  ;;  %p316_p5 = scmp.lt.s32.totalorder %s310_s27, %s310_s27 }
   0xc   :  { %p317_p6 = por %p316_p5, %p315_p4 }
   0xe   :  { %p318_p7 = pnand %p317_p6, %p311_p3 }
  0x10   :  { %321 = shalt.err (!%p318_p7)
}
  0x11   :  { %s373_s28 = smov 128   ;;  %s374_s29 = smov 8  }
  0x12   :  { %24 = dma.hbm_to_vmem [thread:$0]  %s474_s0, 256, %s19_s19, [#allocation4], %s373_s28, %s373_s28, %s374_s29  }
  0x13   :  { %s375_s7 = smov [#allocation6]   ;;  %s322_s11 = scalar_lea.hbm %s477_s3, 1024 }
  0x14   :  { %s34_s8 = sshll.u32 %s375_s7, 4  ;;  %p323_p8 = scmp.ne.s32.totalorder %s477_s3, %s322_s11  ;;  %s35_s8 = int_to_ptr.vmem [resolvable:$true] %s34_s8 }
  0x15   :  { %p326_p9 = scmp.lt.u32.totalorder %s322_s11, %s477_s3 }
  0x17   :  { %p328_p10 = pnand %p326_p9, %p323_p8 }
  0x19   :  { %331 = shalt.err (!%p328_p10)
}
  0x1a   :  { %s332_s16 = scalar_lea.vmem %s35_s8, 1024  ;;  %p337_p12 = scmp.lt.s32.totalorder %s35_s8, %s35_s8 }
  0x1b   :  { %p333_p11 = scmp.ne.s32.totalorder %s35_s8, %s332_s16  ;;  %p338_p13 = scmp.lt.s32.totalorder %s332_s16, %s332_s16 }
  0x1d   :  { %p339_p0 = por %p338_p13, %p337_p12 }
  0x1f   :  { %p340_p1 = pnand %p339_p0, %p333_p11 }
  0x21   :  { %343 = shalt.err (!%p340_p1)
}
  0x22   :  { %s376_s0 = smov 64   ;;  %s377_s17 = smov 4  }
  0x23   :  { %40 = dma.hbm_to_vmem [thread:$0]  %s477_s3, 1024, %s35_s8, [#allocation7], %s376_s0, %s376_s0, %s377_s17  }
  0x24   :  { %366 = dma.done.wait [#allocation4], 256  }
  0x25   :  { %367 = vsyncadd [#allocation4], 4294967040 }
  0x26   :  { %368 = dma.done.wait [#allocation7], 1024  }
  0x27   :  { %369 = vsyncadd [#allocation7], 4294966272  ;;  %v438_v0 = vld [vmem:[#allocation3] sm:$0xff]  ;;  %v440_v1 = vld [vmem:[#allocation3 + $0x8] sm:$0xff]  ;;  %v378_v5 = vmov 0.0   ;;  %vm379_vm0 = vmmov 0  }
  0x28   :  { %56 = vadd.xlane.f32.xlu0 %v438_v0  ;;  %v62_v2 = vmul.f32 %v438_v0, %v438_v0  ;;  %v63_v3 = vmul.f32 %v440_v1, %v440_v1  ;;  %v288_v4 = vld [vmem:[#allocation6] sm:$0xff]   ;;  %259 = vmatprep.subr.bf16.mxu0 %v378_v5  ;;  %v289_v6 = vld [vmem:[#allocation6 + $0x8] sm:$0xff]   ;;  %v290_v7 = vld [vmem:[#allocation6 + $0x10] sm:$0xff]   ;;  %s380_s24 = smov [#allocation8]  }
  0x29   :  { %260 = vmatpush3.bf16.msra.mxu0 %v288_v4  ;;  %v291_v8 = vld [vmem:[#allocation6 + $0x18] sm:$0xff]   ;;  %275 = vmatprep.mubr.msk.bf16.mxu0 %vm379_vm0, %v378_v5  ;;  %v292_v9 = vld [vmem:[#allocation6 + $0x20] sm:$0xff]   ;;  %v293_v10 = vld [vmem:[#allocation6 + $0x28] sm:$0xff]   ;;  %s226_s25 = sshll.u32 %s380_s24, 4  ;;  %s227_s25 = int_to_ptr.vmem [resolvable:$true] %s226_s25 }
  0x2a   :  { %64 = vadd.xlane.f32.xlu1 %v62_v2  ;;  %261 = vmatprep.subr.bf16.mxu0 %v378_v5  ;;  %v294_v11 = vld [vmem:[#allocation6 + $0x30] sm:$0xff]   ;;  %v295_v12 = vld [vmem:[#allocation6 + $0x38] sm:$0xff]   ;;  %p349_p3 = scmp.lt.s32.totalorder %s227_s25, %s227_s25 }
  0x2b   :  { %v239_v29 = vld [vmem:[%s475_s1] ss:$0 sm:$0xff] }
  0x2c   :  { %58 = vadd.xlane.f32.xlu0 %v440_v1  ;;  %v240_v34 = vld [vmem:[%s476_s2] ss:$0 sm:$0xff]  ;;  %s344_s2 = scalar_lea.vmem %s227_s25, 256 }
  0x2d   :  { %262 = vmatpush3.bf16.msra.mxu0 %v289_v6  ;;  %v241_v44 = vld [vmem:[%s478_s4] ss:$0 sm:$0xff]  ;;  %p345_p2 = scmp.ne.s32.totalorder %s227_s25, %s344_s2  ;;  %p350_p4 = scmp.lt.s32.totalorder %s344_s2, %s344_s2 }
  0x2e   :  { %66 = vadd.xlane.f32.xlu1 %v63_v3  ;;  %263 = vmatprep.subr.bf16.mxu0 %v378_v5 }
  0x2f   :  { %p351_p5 = por %p350_p4, %p349_p3 }
  0x31   :  { %264 = vmatpush3.bf16.msra.mxu0 %v290_v7  ;;  %p352_p6 = pnand %p351_p5, %p345_p2 }
  0x32   :  { %265 = vmatprep.subr.bf16.mxu0 %v378_v5 }
  0x35   :  { %266 = vmatpush3.bf16.msra.mxu0 %v291_v8 }
  0x36   :  { %267 = vmatprep.subr.bf16.mxu0 %v378_v5 }
  0x39   :  { %268 = vmatpush3.bf16.msra.mxu0 %v292_v9 }
  0x3a   :  { %269 = vmatprep.subr.bf16.mxu0 %v378_v5 }
  0x3d   :  { %270 = vmatpush3.bf16.msra.mxu0 %v293_v10 }
  0x3e   :  { %271 = vmatprep.subr.bf16.mxu0 %v378_v5 }
  0x41   :  { %272 = vmatpush3.bf16.msra.mxu0 %v294_v11 }
  0x42   :  { %273 = vmatprep.subr.bf16.mxu0 %v378_v5 }
  0x45   :  { %274 = vmatpush3.bf16.msra.mxu0 %v295_v12 }
  0xb5   :  { %v57_v13 = vpop.xlane.xlu0 %56 }
  0xb6   :  { %v60_v14 = vmul.f32 0.03125, %v57_v13 }
  0xb7   :  { %v65_v15 = vpop.xlane.xlu1 %64 }
  0xb8   :  { %v70_v16 = vmul.f32 %v60_v14, %v60_v14  ;;  %v68_v17 = vmul.f32 0.03125, %v65_v15 }
  0xb9   :  { %v59_v18 = vpop.xlane.xlu0 %58 }
  0xba   :  { %v72_v19 = vsub.f32 %v68_v17, %v70_v16  ;;  %v61_v20 = vmul.f32 0.03125, %v59_v18 }
  0xbb   :  { %v67_v21 = vpop.xlane.xlu1 %66 }
  0xbc   :  { %v74_v22 = vmax.f32 %v72_v19, 0.0  ;;  %v71_v23 = vmul.f32 %v61_v20, %v61_v20  ;;  %v69_v24 = vmul.f32 0.03125, %v67_v21 }
  0xbe   :  { %v76_v25 = vadd.f32 1e-05, %v74_v22  ;;  %v73_v26 = vsub.f32 %v69_v24, %v71_v23 }
  0xc0   :  { %296 = vrsqrt.f32 %v76_v25  ;;  %v75_v27 = vmax.f32 %v73_v26, 0.0 }
  0xc2   :  { %v77_v28 = vadd.f32 1e-05, %v75_v27 }
  0xc4   :  { %298 = vrsqrt.f32 %v77_v28 }
  0xca   :  { %v297_v30 = vpop.eup %296 }
  0xcb   :  { %v87_v31 = vmul.f32 %v297_v30, %v239_v29 }
  0xcd   :  { %v90_v32 = vmul.f32 %v87_v31, %v60_v14  ;;  %v100_v39 = vmul.f32 %v87_v31, %v438_v0 }
  0xce   :  { %v299_v33 = vpop.eup %298 }
  0xcf   :  { %v88_v35 = vmul.f32 %v299_v33, %v239_v29  ;;  %v98_v37 = vsub.f32 %v240_v34, %v90_v32 }
  0xd1   :  { %v91_v36 = vmul.f32 %v88_v35, %v61_v20  ;;  %v101_v40 = vmul.f32 %v88_v35, %v440_v1  ;;  %v102_v41 = vadd.f32 %v100_v39, %v98_v37 }
  0xd3   :  { %v99_v38 = vsub.f32 %v240_v34, %v91_v36 }
  0xd5   :  { %v103_v42 = vadd.f32 %v101_v40, %v99_v38 }
  0xd7   :  { %v104_v43 = vpack.c.bf16 %v103_v42, %v102_v41 }
  0xd9   :  { %276 = vmatmul.mubr.bf16.vlgmr.msra.gmra.mrb[0].mxu0 %v104_v43 }
 0x1ac   :  { %v212_v45 = vpop.f32.mrb[0].mxu0 }
 0x1ad   :  { %v213_v46 = vadd.f32 %v241_v44, %v212_v45  ;;  %v277_v47 = vpop.f32.mrb[1].mxu0 }
 0x1ae   :  { %v215_v48 = vpop.f32.mrb[2].mxu0 }
 0x1af   :  { %219 = vst [vmem:[#allocation8] sm:$0xff] %v213_v46  ;;  %v216_v49 = vadd.f32 %v241_v44, %v215_v48  ;;  %v278_v50 = vpop.f32.mrb[3].mxu0 }
 0x1b1   :  { %220 = vst [vmem:[#allocation8 + $0x8] sm:$0xff] %v216_v49 }
 0x1b2   :  { %355 = shalt.err (!%p352_p6)
}
 0x1b3   :  { %s356_s27 = scalar_lea.hbm %s479_s5, 256 }
 0x1b4   :  { %p357_p7 = scmp.ne.s32.totalorder %s479_s5, %s356_s27  ;;  %p360_p8 = scmp.lt.u32.totalorder %s356_s27, %s479_s5 }
 0x1b6   :  { %p362_p9 = pnand %p360_p8, %p357_p7 }
 0x1b8   :  { %365 = shalt.err (!%p362_p9)
}
 0x1b9   :  { %232 = dma.vmem_to_hbm [thread:$0]  %s227_s25, 256, %s479_s5, [#allocation5], %s373_s28, %s373_s28, %s374_s29  }
 0x1ba   :  { %370 = dma.done.wait [#allocation5], 256  }
 0x1bb   :  { %371 = vsyncadd [#allocation5], 4294967040 }
 0x1bc   :  { %236 = vsyncpa [#allocation4], 1 }
 0x1bd   :  { %237 = vsyncpa [#allocation7], 1 }
 0x1be   :  { %238 = vsyncpa [#allocation5], 1 }

</bundles_post_ra>
